<compile_context>
chip_gen: v7x
topology: tpu7x:2x2x1
jax: 0.10.0
libtpu: 0.0.40
codegen_flags: <defaults>
</compile_context>

<pallas_src>
import functools

import jax
import jax.numpy as jnp
from jax.experimental import pallas as pl
from jax.experimental.pallas import tpu as pltpu


def _gaussian_noise_kernel(x_ref, bits_ref, o_ref, *, mean, sigma):
    # bits_ref holds one int32 per TWO output elements (top/bottom half rows).
    half = bits_ref.shape[0]            # == block_rows // 2 (static)
    bits = bits_ref[...]                # int32, (half, TL)

    # Split each 32-bit draw into two independent 16-bit uniforms.
    hi = (bits >> 16) & 0xFFFF          # arithmetic shift + mask -> [0, 65535]
    lo = bits & 0xFFFF                  # [0, 65535]
    u1 = (hi.astype(jnp.float32) + 0.5) * (1.0 / 65536.0)   # (0, 1): log-safe
    u2 = lo.astype(jnp.float32) * (1.0 / 65536.0)           # [0, 1)

    # Box-Muller: both outputs are used (z1, z2 are independent N(0, 1)).
    r = jnp.sqrt(-2.0 * jnp.log(u1))
    theta = (2.0 * jnp.pi) * u2
    z1 = r * jnp.cos(theta)
    z2 = r * jnp.sin(theta)

    x = x_ref[...].astype(jnp.float32)
    top = x[:half, :] + (mean + sigma * z1)
    bot = x[half:, :] + (mean + sigma * z2)
    o_ref[:half, :] = jnp.clip(top, 0.0, 1.0).astype(o_ref.dtype)
    o_ref[half:, :] = jnp.clip(bot, 0.0, 1.0).astype(o_ref.dtype)


def _round_up(a, b):
    return -(-a // b) * b


def random_gaussian_noise(imgs, seed, mean=0.0, var=1.0, *,
                          block_rows=512, lane_width=512):
    """JAX/Pallas equivalent of RandomGaussianNoise(mean, var).forward(imgs).

    imgs: float array (e.g. NCHW); seed: python int for the noise PRNG.
    """
    sigma = float(var) ** 0.5
    orig_shape = imgs.shape
    dtype = imgs.dtype
    total = int(imgs.size)

    # Lane-dense 2D slab: lane axis fixed at `lane_width` (multiple of 128).
    TL = int(lane_width)
    rows = -(-total // TL)
    TM = min(int(block_rows), _round_up(rows, 16))   # even, multiple of 8
    rows_p = _round_up(rows, TM)
    total_p = rows_p * TL

    flat = imgs.reshape(-1)
    if total_p != total:
        flat = jnp.pad(flat, (0, total_p - total))
    x2d = flat.reshape(rows_p, TL)

    # One uint32 draw per two output elements (two 16-bit uniforms each).
    key = jax.random.PRNGKey(int(seed))
    bits = jax.random.bits(key, (rows_p // 2, TL), dtype=jnp.uint32)
    bits = jax.lax.bitcast_convert_type(bits, jnp.int32)

    kernel = functools.partial(_gaussian_noise_kernel,
                               mean=float(mean), sigma=sigma)

    nbytes = total_p * jnp.dtype(dtype).itemsize
    out2d = pl.pallas_call(
        kernel,
        out_shape=jax.ShapeDtypeStruct((rows_p, TL), dtype),
        grid=(rows_p // TM,),
        in_specs=[
            pl.BlockSpec((TM, TL), lambda i: (i, 0)),        # image tile
            pl.BlockSpec((TM // 2, TL), lambda i: (i, 0)),   # random bits tile
        ],
        out_specs=pl.BlockSpec((TM, TL), lambda i: (i, 0)),
        compiler_params=pltpu.CompilerParams(
            dimension_semantics=("parallel",),
        ),
        cost_estimate=pl.CostEstimate(
            flops=10 * total_p,
            transcendentals=2 * total_p,
            bytes_accessed=2 * nbytes + 2 * total_p,
        ),
    )(x2d, bits)

    return out2d.reshape(-1)[:total].reshape(orig_shape)


if __name__ == "__main__":
    key = jax.random.PRNGKey(0)
    # Small NCHW batch consistent with the module's forward.
    imgs = jax.random.uniform(key, (2, 4, 16, 16), dtype=jnp.float32)

    out = random_gaussian_noise(imgs, seed=0, mean=0.0, var=1.0)
    out = jax.block_until_ready(out)

    # Sanity checks: shape/dtype preserved, values clamped to [0, 1].
    assert out.shape == imgs.shape
    assert out.dtype == imgs.dtype
    assert float(out.min()) >= 0.0 and float(out.max()) <= 1.0
    # Noise actually applied (output differs from input somewhere).
    assert float(jnp.abs(out - imgs).max()) > 0.0

    print("KERNEL_OK")
</pallas_src>

<mosaic_0001>
module attributes {stable_mosaic.version = 11 : i64} {
  func.func @_gaussian_noise_kernel(%arg0: i32, %arg1: memref<16x512xf32, #tpu.memory_space<vmem>>, %arg2: memref<8x512xi32, #tpu.memory_space<vmem>>, %arg3: memref<16x512xf32, #tpu.memory_space<vmem>>) attributes {dimension_semantics = [#tpu.dimension_semantics<parallel>], iteration_bounds = array<i64: 1>, scalar_prefetch = 0 : i64, scratch_operands = 0 : i64, tpu.core_type = #tpu.core_type<tc>, window_params = [{transform_indices = @transform_0, window_bounds = array<i64: 16, 512>}, {transform_indices = @transform_1, window_bounds = array<i64: 8, 512>}, {transform_indices = @transform_2, window_bounds = array<i64: 16, 512>}]} {
    %c0 = arith.constant 0 : index
    %c0_0 = arith.constant 0 : index
    %0 = vector.load %arg2[%c0, %c0_0] : memref<8x512xi32, #tpu.memory_space<vmem>>, vector<8x512xi32>
    %c16_i32 = arith.constant 16 : i32
    %1 = vector.broadcast %c16_i32 : i32 to vector<8x512xi32>
    %2 = arith.shrsi %0, %1 : vector<8x512xi32>
    %c65535_i32 = arith.constant 65535 : i32
    %3 = vector.broadcast %c65535_i32 : i32 to vector<8x512xi32>
    %4 = arith.andi %2, %3 : vector<8x512xi32>
    %c65535_i32_1 = arith.constant 65535 : i32
    %5 = vector.broadcast %c65535_i32_1 : i32 to vector<8x512xi32>
    %6 = arith.andi %0, %5 : vector<8x512xi32>
    %7 = arith.sitofp %4 : vector<8x512xi32> to vector<8x512xf32>
    %cst = arith.constant 5.000000e-01 : f32
    %8 = vector.broadcast %cst : f32 to vector<8x512xf32>
    %9 = arith.addf %7, %8 : vector<8x512xf32>
    %cst_2 = arith.constant 1.52587891E-5 : f32
    %10 = vector.broadcast %cst_2 : f32 to vector<8x512xf32>
    %11 = arith.mulf %9, %10 : vector<8x512xf32>
    %12 = arith.sitofp %6 : vector<8x512xi32> to vector<8x512xf32>
    %cst_3 = arith.constant 1.52587891E-5 : f32
    %13 = vector.broadcast %cst_3 : f32 to vector<8x512xf32>
    %14 = arith.mulf %12, %13 : vector<8x512xf32>
    %15 = math.log %11 : vector<8x512xf32>
    %cst_4 = arith.constant -2.000000e+00 : f32
    %16 = vector.broadcast %cst_4 : f32 to vector<8x512xf32>
    %17 = arith.mulf %16, %15 : vector<8x512xf32>
    %18 = math.sqrt %17 : vector<8x512xf32>
    %cst_5 = arith.constant 6.28318548 : f32
    %19 = vector.broadcast %cst_5 : f32 to vector<8x512xf32>
    %20 = arith.mulf %19, %14 : vector<8x512xf32>
    %21 = math.cos %20 : vector<8x512xf32>
    %22 = arith.mulf %18, %21 : vector<8x512xf32>
    %23 = math.sin %20 : vector<8x512xf32>
    %24 = arith.mulf %18, %23 : vector<8x512xf32>
    %c0_6 = arith.constant 0 : index
    %c0_7 = arith.constant 0 : index
    %25 = vector.load %arg1[%c0_6, %c0_7] : memref<16x512xf32, #tpu.memory_space<vmem>>, vector<16x512xf32>
    %26 = vector.extract_strided_slice %25 {offsets = [0, 0], sizes = [8, 512], strides = [1, 1]} : vector<16x512xf32> to vector<8x512xf32>
    %cst_8 = arith.constant 1.000000e+00 : f32
    %27 = vector.broadcast %cst_8 : f32 to vector<8x512xf32>
    %28 = arith.mulf %27, %22 : vector<8x512xf32>
    %cst_9 = arith.constant 0.000000e+00 : f32
    %29 = vector.broadcast %cst_9 : f32 to vector<8x512xf32>
    %30 = arith.addf %29, %28 : vector<8x512xf32>
    %31 = arith.addf %26, %30 : vector<8x512xf32>
    %32 = vector.extract_strided_slice %25 {offsets = [8, 0], sizes = [8, 512], strides = [1, 1]} : vector<16x512xf32> to vector<8x512xf32>
    %cst_10 = arith.constant 1.000000e+00 : f32
    %33 = vector.broadcast %cst_10 : f32 to vector<8x512xf32>
    %34 = arith.mulf %33, %24 : vector<8x512xf32>
    %cst_11 = arith.constant 0.000000e+00 : f32
    %35 = vector.broadcast %cst_11 : f32 to vector<8x512xf32>
    %36 = arith.addf %35, %34 : vector<8x512xf32>
    %37 = arith.addf %32, %36 : vector<8x512xf32>
    %cst_12 = arith.constant 0.000000e+00 : f32
    %cst_13 = arith.constant 1.000000e+00 : f32
    %38 = vector.broadcast %cst_12 : f32 to vector<8x512xf32>
    %39 = arith.maximumf %38, %31 : vector<8x512xf32>
    %40 = vector.broadcast %cst_13 : f32 to vector<8x512xf32>
    %41 = arith.minimumf %40, %39 : vector<8x512xf32>
    %c0_14 = arith.constant 0 : index
    %c0_15 = arith.constant 0 : index
    %42 = vector.load %arg3[%c0_14, %c0_15] : memref<16x512xf32, #tpu.memory_space<vmem>>, vector<8x512xf32>
    tpu.vector_store %arg3[%c0_14, %c0_15], %41 {strides = array<i32>} : memref<16x512xf32, #tpu.memory_space<vmem>>, vector<8x512xf32>,
    %cst_16 = arith.constant 0.000000e+00 : f32
    %cst_17 = arith.constant 1.000000e+00 : f32
    %43 = vector.broadcast %cst_16 : f32 to vector<8x512xf32>
    %44 = arith.maximumf %43, %37 : vector<8x512xf32>
    %45 = vector.broadcast %cst_17 : f32 to vector<8x512xf32>
    %46 = arith.minimumf %45, %44 : vector<8x512xf32>
    %c8 = arith.constant 8 : index
    %c0_18 = arith.constant 0 : index
    %47 = vector.load %arg3[%c8, %c0_18] : memref<16x512xf32, #tpu.memory_space<vmem>>, vector<8x512xf32>
    tpu.vector_store %arg3[%c8, %c0_18], %46 {strides = array<i32>} : memref<16x512xf32, #tpu.memory_space<vmem>>, vector<8x512xf32>,
    return
  }
  func.func @transform_0(%arg0: i32) -> (i32, i32) {
    %c0_i32 = arith.constant 0 : i32
    %c0_i32_0 = arith.constant 0 : i32
    return %arg0, %c0_i32 : i32, i32
  }
  func.func @transform_1(%arg0: i32) -> (i32, i32) {
    %c0_i32 = arith.constant 0 : i32
    %c0_i32_0 = arith.constant 0 : i32
    return %arg0, %c0_i32 : i32, i32
  }
  func.func @transform_2(%arg0: i32) -> (i32, i32) {
    %c0_i32 = arith.constant 0 : i32
    %c0_i32_0 = arith.constant 0 : i32
    return %arg0, %c0_i32 : i32, i32
  }
}

</mosaic_0001>

<bundles_post_ra>
// kernel: tpu_custom_call.1
= control target key start
LH: loop header
LB: loop body
LE: loop exit
PB: predicated region body
PF: predicated region fallthrough
CT: control target
= control target key end

     0   :  { %7 = vsyncpa [#allocation3], 0  ;;  %s1676_s0 = inlined_call_operand.hbm [shape: f32[16,512], index: 0, kind: input, shape index: {}]   ;;  %s1677_s1 = inlined_call_operand.hbm [shape: s32[8,512], index: 1, kind: input, shape index: {}]   ;;  %s1678_s2 = inlined_call_operand.hbm [shape: f32[16,512], index: 2, kind: output, shape index: {}]  }
   0x1   :  { %8 = vsyncpa [#allocation6], 0 }
   0x2   :  { %9 = vsyncpa [#allocation4], 0  ;;  %s1187_s9 = smov [#allocation2]   ;;  %s1115_s13 = scalar_lea.hbm %s1676_s0, 1024 }
   0x3   :  { %s15_s10 = sshll.u32 %s1187_s9, 4  ;;  %p1116_p0 = scmp.ne.s32.totalorder %s1676_s0, %s1115_s13  ;;  %s16_s10 = int_to_ptr.vmem [resolvable:$true] %s15_s10 }
   0x4   :  { %p1119_p1 = scmp.lt.u32.totalorder %s1115_s13, %s1676_s0 }
   0x6   :  { %p1121_p2 = pnand %p1119_p1, %p1116_p0 }
   0x8   :  { %1124 = shalt.err (!%p1121_p2)
}
   0x9   :  { %s1125_s18 = scalar_lea.vmem %s16_s10, 1024  ;;  %p1130_p4 = scmp.lt.s32.totalorder %s16_s10, %s16_s10 }
   0xa   :  { %p1126_p3 = scmp.ne.s32.totalorder %s16_s10, %s1125_s18  ;;  %p1131_p5 = scmp.lt.s32.totalorder %s1125_s18, %s1125_s18 }
   0xc   :  { %p1132_p6 = por %p1131_p5, %p1130_p4 }
   0xe   :  { %p1133_p7 = pnand %p1132_p6, %p1126_p3 }
  0x10   :  { %1136 = shalt.err (!%p1133_p7)
}
  0x11   :  { %s1188_s19 = smov 512   ;;  %s1189_s20 = smov 32  }
  0x12   :  { %21 = dma.hbm_to_vmem [thread:$0]  %s1676_s0, 1024, %s16_s10, [#allocation3], %s1188_s19, %s1188_s19, %s1189_s20  }
  0x13   :  { %s1190_s23 = smov [#allocation5]   ;;  %s1137_s27 = scalar_lea.hbm %s1677_s1, 512 }
  0x14   :  { %s28_s24 = sshll.u32 %s1190_s23, 4  ;;  %p1138_p8 = scmp.ne.s32.totalorder %s1677_s1, %s1137_s27  ;;  %s29_s24 = int_to_ptr.vmem [resolvable:$true] %s28_s24 }
  0x15   :  { %p1141_p9 = scmp.lt.u32.totalorder %s1137_s27, %s1677_s1 }
  0x17   :  { %p1143_p10 = pnand %p1141_p9, %p1138_p8 }
  0x19   :  { %1146 = shalt.err (!%p1143_p10)
}
  0x1a   :  { %s1147_s4 = scalar_lea.vmem %s29_s24, 512  ;;  %p1152_p12 = scmp.lt.s32.totalorder %s29_s24, %s29_s24 }
  0x1b   :  { %p1148_p11 = scmp.ne.s32.totalorder %s29_s24, %s1147_s4  ;;  %p1153_p13 = scmp.lt.s32.totalorder %s1147_s4, %s1147_s4 }
  0x1d   :  { %p1154_p0 = por %p1153_p13, %p1152_p12 }
  0x1f   :  { %p1155_p1 = pnand %p1154_p0, %p1148_p11 }
  0x21   :  { %1158 = shalt.err (!%p1155_p1)
}
  0x22   :  { %31 = dma.hbm_to_vmem [thread:$0]  %s1677_s1, 512, %s29_s24, [#allocation6]  }
  0x23   :  { %1181 = dma.done.wait [#allocation3], 1024  }
  0x24   :  { %1182 = vsyncadd [#allocation3], 4294966272 }
  0x25   :  { %1183 = dma.done.wait [#allocation6], 512  }
  0x26   :  { %1184 = vsyncadd [#allocation6], 4294966784  ;;  %v38_v0 = vld [vmem:[#allocation5] sm:$0xff]  ;;  %v39_v1 = vld [vmem:[#allocation5 + $0x8] sm:$0xff]  ;;  %v1191_v40 = vmov 683565275  }
  0x27   :  { %v50_v2 = vand.u32 65535, %v38_v0  ;;  %v51_v3 = vand.u32 65535, %v39_v1  ;;  %v1020_v6 = vshrl.u32 %v38_v0, 16  ;;  %v40_v11 = vld [vmem:[#allocation5 + $0x10] sm:$0xff]  ;;  %v1021_v14 = vshrl.u32 %v39_v1, 16  ;;  %v1247_v29 = vld [vmem:[#allocation5 + $0x18] sm:$0xff] }
  0x28   :  { %v52_v15 = vand.u32 65535, %v40_v11  ;;  %v1022_v26 = vshrl.u32 %v40_v11, 16  ;;  %v1023_v37 = vshrl.u32 %v1247_v29, 16  ;;  %v53_v38 = vand.u32 65535, %v1247_v29  ;;  %s1197_s1 = smov [#allocation7]  }
  0x29   :  { %v66_v4 = vcvt.s32.f32 %v50_v2  ;;  %v67_v5 = vcvt.s32.f32 %v51_v3  ;;  %v54_v12 = vcvt.s32.f32 %v1020_v6  ;;  %v55_v20 = vcvt.s32.f32 %v1021_v14  ;;  %s1007_s6 = sshll.u32 %s1197_s1, 4  ;;  %s1008_s6 = int_to_ptr.vmem [resolvable:$true] %s1007_s6 }
  0x2a   :  { %v68_v23 = vcvt.s32.f32 %v52_v15  ;;  %v1251_v35 = vcvt.s32.f32 %v1022_v26  ;;  %v1192_v42 = vmov 2475754826   ;;  %v1193_v44 = vmov 2131351028   ;;  %s1159_s7 = scalar_lea.vmem %s1008_s6, 1024  ;;  %p1164_p3 = scmp.lt.s32.totalorder %s1008_s6, %s1008_s6 }
  0x2b   :  { %v70_v7 = vmul.f32 1.5258789e-05, %v66_v4  ;;  %v71_v8 = vmul.f32 1.5258789e-05, %v67_v5  ;;  %v58_v18 = vadd.f32 0.5, %v54_v12  ;;  %v59_v28 = vadd.f32 0.5, %v55_v20  ;;  %p1160_p2 = scmp.ne.s32.totalorder %s1008_s6, %s1159_s7  ;;  %p1165_p4 = scmp.lt.s32.totalorder %s1159_s7, %s1159_s7 }
  0x2c   :  { %v72_v33 = vmul.f32 1.5258789e-05, %v68_v23  ;;  %v1194_v51 = vmov 2102212464   ;;  %v1195_v55 = vmov 920167782  }
  0x2d   :  { %v1240_v9 = vmul.f32 6.2831855, %v70_v7  ;;  %v1242_v10 = vmul.f32 6.2831855, %v71_v8  ;;  %v62_v27 = vmul.f32 1.5258789e-05, %v58_v18  ;;  %v63_v47 = vmul.f32 1.5258789e-05, %v59_v28  ;;  %p1166_p5 = por %p1165_p4, %p1164_p3 }
  0x2e   :  { %v1258_v48 = vmul.f32 6.2831855, %v72_v33  ;;  %v1196_v62 = vmov 1326507024  }
  0x2f   :  { %v121_v13 = vand.u32 2139095040, %v1240_v9  ;;  %v224_v17 = vand.u32 2139095040, %v1242_v10  ;;  %v118_v22 = vand.u32 2147483647, %v1240_v9  ;;  %1083 = vlog2.f32 %v62_v27  ;;  %p1167_p6 = pnand %p1166_p5, %p1160_p2 }
  0x30   :  { %v221_v57 = vand.u32 2147483647, %v1242_v10  ;;  %v327_v1 = vand.u32 2139095040, %v1258_v48  ;;  %1085 = vlog2.f32 %v63_v47  ;;  %vm120_vm15 = vcmp.lt.s32.totalorder %v1240_v9, 0 }
  0x31   :  { %v122_v16 = vshrl.u32 %v121_v13, 23  ;;  %v225_v21 = vshrl.u32 %v224_v17, 23  ;;  %v125_v30 = vand.u32 8388607, %v118_v22 }
  0x32   :  { %v228_v17 = vand.u32 8388607, %v221_v57 }
  0x33   :  { %v1024_v19 = vadd.s32 4294967169, %v122_v16  ;;  %v1028_v25 = vadd.s32 4294967169, %v225_v21  ;;  %v126_v46 = vor.u32 8388608, %v125_v30  ;;  %v324_v21 = vand.u32 2147483647, %v1258_v48 }
  0x34   :  { %v229_v47 = vor.u32 8388608, %v228_v17 }
  0x35   :  { %v128_v24 = vadd.s32 1, %v1024_v19  ;;  %v231_v32 = vadd.s32 1, %v1028_v25  ;;  %v166_v4 = vshll.u32 %v126_v46, 8 }
  0x37   :  { %vm129_vm0 = vcmp.gt.s32.totalorder %v128_v24, 0  ;;  %vm232_vm1 = vcmp.gt.s32.totalorder %v231_v32, 0 }
  0x38   :  { %v130_v31 = vsel %vm129_vm0, %v128_v24, 0  ;;  %v233_v0 = vsel %vm232_vm1, %v231_v32, 0  ;;  %vm1389_vm0 = vcmp.le.f32.partialorder %v118_v22, 0.7853982 }
  0x39   :  { %v132_v34 = vand.u32 31, %v130_v31  ;;  %v131_v36 = vshrl.u32 %v130_v31, 5  ;;  %v235_v13 = vand.u32 31, %v233_v0  ;;  %v1084_v14 = vpop.eup %1083  ;;  %v328_v31 = vshrl.u32 %v327_v1, 23 }
  0x3a   :  { %v75_v32 = vmul.f32 0.6931472, %v1084_v14  ;;  %v234_v33 = vshrl.u32 %v233_v0, 5  ;;  %v1086_v1 = vpop.eup %1085 }
  0x3b   :  { %v133_v39 = vsub.s32 32, %v132_v34  ;;  %v135_v41 = vshll.u32 %v1191_v40, %v132_v34  ;;  %v138_v43 = vshll.u32 %v1192_v42, %v132_v34  ;;  %v141_v45 = vshll.u32 %v1193_v44, %v132_v34 }
  0x3c   :  { %v144_v53 = vshll.u32 %v1194_v51, %v132_v34  ;;  %v147_v56 = vshll.u32 %v1195_v55, %v132_v34  ;;  %vm150_vm2 = vcmp.lt.s32.totalorder %v131_v36, 1  ;;  %vm153_vm3 = vcmp.lt.s32.totalorder %v131_v36, 4 }
  0x3d   :  { %v136_v49 = vshrl.u32 %v1192_v42, %v133_v39  ;;  %v139_v50 = vshrl.u32 %v1193_v44, %v133_v39  ;;  %v142_v52 = vshrl.u32 %v1194_v51, %v133_v39  ;;  %v134_v54 = vshrl.u32 %v1191_v40, %v133_v39 }
  0x3e   :  { %v145_v61 = vshrl.u32 %v1195_v55, %v133_v39  ;;  %v148_v63 = vshrl.u32 %v1196_v62, %v133_v39  ;;  %vm152_vm4 = vcmp.lt.s32.totalorder %v131_v36, 3  ;;  %vm151_vm5 = vcmp.lt.s32.totalorder %v131_v36, 2 }
  0x3f   :  { %v137_v58 = vor.u32 %v136_v49, %v135_v41  ;;  %v140_v59 = vor.u32 %v139_v50, %v138_v43  ;;  %v143_v60 = vor.u32 %v142_v52, %v141_v45  ;;  %v236_v20 = vsub.s32 32, %v235_v13 }
  0x40   :  { %v146_v2 = vor.u32 %v145_v61, %v144_v53  ;;  %v149_v5 = vor.u32 %v148_v63, %v147_v56  ;;  %v238_v30 = vshll.u32 %v1191_v40, %v235_v13  ;;  %v241_v39 = vshll.u32 %v1192_v42, %v235_v13 }
  0x41   :  { %v155_v3 = vsel %vm153_vm3, %v143_v60, 2102212464  ;;  %v154_v6 = vsel %vm150_vm2, %v134_v54, %v137_v58  ;;  %v158_v7 = vsel %vm150_vm2, %v137_v58, %v140_v59  ;;  %v162_v12 = vsel %vm150_vm2, %v140_v59, %v143_v60 }
  0x42   :  { %v156_v8 = vsel %vm152_vm4, %v140_v59, %v155_v3  ;;  %v159_v11 = vsel %vm153_vm3, %v146_v2, 920167782  ;;  %v163_v16 = vsel %vm153_vm3, %v149_v5, 1326507024  ;;  %v239_v34 = vshrl.u32 %v1192_v42, %v236_v20 }
  0x43   :  { %v160_v15 = vsel %vm152_vm4, %v143_v60, %v159_v11  ;;  %v164_v19 = vsel %vm152_vm4, %v146_v2, %v163_v16  ;;  %v157_v23 = vsel %vm151_vm5, %v154_v6, %v156_v8  ;;  %v242_v36 = vshrl.u32 %v1193_v44, %v236_v20 }
  0x44   :  { %v161_v18 = vsel %vm151_vm5, %v158_v7, %v160_v15  ;;  %v165_v24 = vsel %vm151_vm5, %v162_v12, %v164_v19  ;;  %v173_v41 = vmul.u32 %v166_v4, %v157_v23  ;;  %v244_v43 = vshll.u32 %v1193_v44, %v235_v13 }
  0x45   :  { %v1286_v25 = vmul.u32.u64.low %v166_v4, %v161_v18  ;;  %v1287_v26 = vmul.u32.u64.high %v166_v4, %v161_v18, %v1286_v25  ;;  %v1290_v27 = vmul.u32.u64.low %v166_v4, %v165_v24  ;;  %v1291_v28 = vmul.u32.u64.high %v166_v4, %v165_v24, %v1290_v27 }
  0x46   :  { %v245_v45 = vshrl.u32 %v1194_v51, %v236_v20  ;;  %v247_v49 = vshll.u32 %v1194_v51, %v235_v13  ;;  %v248_v50 = vshrl.u32 %v1195_v55, %v236_v20  ;;  %v240_v52 = vor.u32 %v239_v34, %v238_v30 }
  0x47   :  { %v176_v46 = vadd.s32 1, %v1287_v26  ;;  %vm175_vm6 = vc.u32 %v1291_v28, %v1286_v25  ;;  %v243_v53 = vor.u32 %v242_v36, %v241_v39  ;;  %v1032_v54 = vadd.s32 4294967169, %v328_v31 }
  0x48   :  { %v1304_v56 = vmul.f32 -2.0, %v75_v32  ;;  %v246_v59 = vor.u32 %v245_v45, %v244_v43  ;;  %v249_v60 = vor.u32 %v248_v50, %v247_v49  ;;  %v250_v63 = vshll.u32 %v1195_v55, %v235_v13 }
  0x49   :  { %v177_v58 = vsel %vm175_vm6, %v176_v46, %v1287_v26  ;;  %v251_v0 = vshrl.u32 %v1196_v62, %v236_v20  ;;  %vm253_vm7 = vcmp.lt.s32.totalorder %v234_v33, 1  ;;  %v237_v2 = vshrl.u32 %v1191_v40, %v236_v20 }
  0x4a   :  { %v178_v61 = vadd.s32 %v177_v58, %v173_v41  ;;  %vm254_vm8 = vcmp.lt.s32.totalorder %v234_v33, 2  ;;  %vm255_vm9 = vcmp.lt.s32.totalorder %v234_v33, 3  ;;  %vm256_vm10 = vcmp.lt.s32.totalorder %v234_v33, 4 }
  0x4b   :  { %v252_v4 = vor.u32 %v251_v0, %v250_v63  ;;  %v258_v5 = vsel %vm256_vm10, %v246_v59, 2102212464  ;;  %v261_v6 = vsel %vm253_vm7, %v240_v52, %v243_v53  ;;  %v262_v7 = vsel %vm256_vm10, %v249_v60, 920167782 }
  0x4c   :  { %v179_v3 = vadd.s32 536870912, %v178_v61  ;;  %v269_v8 = vshll.u32 %v229_v47, 8  ;;  %v60_v11 = vadd.f32 0.5, %v1251_v35  ;;  %v69_v12 = vcvt.s32.f32 %v53_v38 }
  0x4d   :  { %1087 = vrsqrt.f32 %v1304_v56  ;;  %v263_v14 = vsel %vm255_vm9, %v246_v59, %v262_v7  ;;  %v265_v15 = vsel %vm253_vm7, %v243_v53, %v246_v59  ;;  %v257_v16 = vsel %vm253_vm7, %v237_v2, %v240_v52 }
  0x4e   :  { %v1317_v13 = vshrl.u32 %v179_v3, 30  ;;  %v259_v17 = vsel %vm255_vm9, %v243_v53, %v258_v5  ;;  %v264_v18 = vsel %vm254_vm8, %v261_v6, %v263_v14  ;;  %v266_v19 = vsel %vm256_vm10, %v252_v4, 1326507024 }
  0x4f   :  { %v267_v38 = vsel %vm255_vm9, %v249_v60, %v266_v19  ;;  %v331_v20 = vand.u32 8388607, %v324_v21  ;;  %v334_v23 = vadd.s32 1, %v1032_v54  ;;  %v77_v24 = vmul.f32 0.6931472, %v1086_v1 }
  0x50   :  { %v181_v35 = vshll.u32 %v1317_v13, 30  ;;  %v268_v26 = vsel %vm254_vm8, %v265_v15, %v267_v38  ;;  %v1330_v27 = vmul.u32.u64.low %v269_v8, %v264_v18  ;;  %v1331_v30 = vmul.u32.u64.high %v269_v8, %v264_v18, %v1330_v27 }
  0x51   :  { %v260_v32 = vsel %vm254_vm8, %v257_v16, %v259_v17  ;;  %v1337_v34 = vmul.u32.u64.low %v269_v8, %v268_v26  ;;  %v1338_v39 = vmul.u32.u64.high %v269_v8, %v268_v26, %v1337_v34  ;;  %v73_v41 = vmul.f32 1.5258789e-05, %v69_v12 }
  0x52   :  { %v1334_v31 = vsub.s32 %v178_v61, %v181_v35  ;;  %v64_v43 = vmul.f32 1.5258789e-05, %v60_v11  ;;  %vm335_vm11 = vcmp.gt.s32.totalorder %v334_v23, 0  ;;  %v57_v45 = vcvt.s32.f32 %v1023_v37 }
  0x53   :  { %v1343_v46 = vmul.f32 -2.0, %v77_v24  ;;  %v276_v47 = vmul.u32 %v269_v8, %v260_v32  ;;  %v279_v49 = vadd.s32 1, %v1331_v30  ;;  %v336_v50 = vsel %vm335_vm11, %v334_v23, 0 }
  0x54   :  { %v184_v36 = vsub.s32 0, %v1334_v31  ;;  %v332_v52 = vor.u32 8388608, %v331_v20  ;;  %vm278_vm12 = vc.u32 %v1338_v39, %v1330_v27  ;;  %v338_v53 = vand.u32 31, %v336_v50 }
  0x55   :  { %v1349_v54 = vmul.f32 6.2831855, %v73_v41  ;;  %v280_v29 = vsel %vm278_vm12, %v279_v49, %v1331_v30  ;;  %1089 = vlog2.f32 %v64_v43  ;;  %v1352_v37 = vadd.f32 0.5, %v57_v45 }
  0x56   :  { %v1025_v33 = vmin.u32 %v184_v36, %v1334_v31  ;;  %1091 = vrsqrt.f32 %v1343_v46  ;;  %v281_v60 = vadd.s32 %v280_v29, %v276_v47  ;;  %v339_v61 = vsub.s32 32, %v338_v53 }
  0x57   :  { %v1088_v58 = vpop.eup %1087  ;;  %v427_v63 = vand.u32 2147483647, %v1349_v54  ;;  %vm88_vm13 = vcmp.eq.f32.partialorder %v1304_v56, inf  ;;  %v91_v0 = vand.u32 2147483648, %v1304_v56  ;;  %v1358_v2 = vshll.u32 %v332_v52, 8 }
  0x58   :  { %v186_v59 = vclz %v1025_v33  ;;  %v87_v3 = vmul.f32 %v1088_v58, %v1304_v56  ;;  %v174_v4 = vadd.s32 %v1286_v25, %v1291_v28  ;;  %v98_v5 = vand.u32 2147483648, %v1343_v46 }
  0x59   :  { %v282_v6 = vadd.s32 536870912, %v281_v60  ;;  %v341_v7 = vshll.u32 %v1191_v40, %v338_v53  ;;  %v344_v8 = vshll.u32 %v1192_v42, %v338_v53  ;;  %v350_v11 = vshll.u32 %v1194_v51, %v338_v53 }
  0x5a   :  { %v1026_v1 = vadd.s32 4294967294, %v186_v59  ;;  %v342_v15 = vshrl.u32 %v1192_v42, %v339_v61  ;;  %v345_v16 = vshrl.u32 %v1193_v44, %v339_v61  ;;  %v351_v18 = vshrl.u32 %v1195_v55, %v339_v61 }
  0x5b   :  { %v1367_v14 = vshrl.u32 %v282_v6, 30  ;;  %v337_v35 = vshrl.u32 %v336_v50, 5  ;;  %v347_v38 = vshll.u32 %v1193_v44, %v338_v53  ;;  %v348_v20 = vshrl.u32 %v1194_v51, %v339_v61 }
  0x5c   :  { %vm1027_vm14 = vcmp.lt.s32.totalorder %v1026_v1, 0  ;;  %v353_v26 = vshll.u32 %v1195_v55, %v338_v53  ;;  %v354_v30 = vshrl.u32 %v1196_v62, %v339_v61  ;;  %v340_v34 = vshrl.u32 %v1191_v40, %v339_v61 }
  0x5d   :  { %v189_v12 = vsel %vm1027_vm14, 0, %v1026_v1  ;;  %v284_v19 = vshll.u32 %v1367_v14, 30  ;;  %v343_v41 = vor.u32 %v342_v15, %v341_v7  ;;  %v346_v49 = vor.u32 %v345_v16, %v344_v8 }
  0x5e   :  { %v190_v17 = vsub.s32 32, %v189_v12  ;;  %v191_v25 = vshll.u32 %v1334_v31, %v189_v12  ;;  %v194_v28 = vsub.s32 4294967266, %v189_v12  ;;  %v1381_v31 = vsel %vm88_vm13, %v1304_v56, %v87_v3 }
  0x5f   :  { %v1384_v32 = vsub.s32 %v281_v60, %v284_v19  ;;  %v1090_v36 = vpop.eup %1089  ;;  %v352_v50 = vor.u32 %v351_v18, %v350_v11  ;;  %v349_v53 = vor.u32 %v348_v20, %v347_v38  ;;  %vm356_vm1 = vcmp.lt.s32.totalorder %v337_v35, 1 }
  0x60   :  { %v192_v23 = vshrl.u32 %v174_v4, %v190_v17  ;;  %v195_v24 = vadd.s32 127, %v194_v28  ;;  %v1092_v33 = vpop.eup %1091  ;;  %vm359_vm2 = vcmp.lt.s32.totalorder %v337_v35, 4  ;;  %v355_v29 = vor.u32 %v354_v30, %v353_v26 }
  0x61   :  { %v287_v52 = vsub.s32 0, %v1384_v32  ;;  %vm358_vm3 = vcmp.lt.s32.totalorder %v337_v35, 3  ;;  %vm95_vm4 = vcmp.eq.f32.partialorder %v1343_v46, inf  ;;  %v79_v60 = vmul.f32 0.6931472, %v1090_v36 }
  0x62   :  { %v193_v45 = vor.u32 %v192_v23, %v191_v25  ;;  %v196_v47 = vshll.u32 %v195_v24, 23  ;;  %vm357_vm5 = vcmp.lt.s32.totalorder %v337_v35, 2  ;;  %v361_v61 = vsel %vm359_vm2, %v349_v53, 2102212464 }
  0x63   :  { %v1029_v22 = vmin.u32 %v287_v52, %v1384_v32  ;;  %v94_v3 = vmul.f32 %v1092_v33, %v1343_v46  ;;  %v364_v4 = vsel %vm356_vm1, %v343_v41, %v346_v49  ;;  %v365_v6 = vsel %vm359_vm2, %v352_v50, 920167782 }
  0x64   :  { %v197_v58 = vor.u32 4788187, %v196_v47  ;;  %v200_v59 = vcvt.s32.f32 %v193_v45  ;;  %v360_v8 = vsel %vm356_vm1, %v340_v34, %v343_v41  ;;  %v366_v11 = vsel %vm358_vm3, %v349_v53, %v365_v6 }
  0x65   :  { %v289_v7 = vclz %v1029_v22  ;;  %v368_v12 = vsel %vm356_vm1, %v346_v49, %v349_v53  ;;  %v362_v16 = vsel %vm358_vm3, %v346_v49, %v361_v61  ;;  %v367_v17 = vsel %vm357_vm5, %v364_v4, %v366_v11 }
  0x66   :  { %v198_v1 = vand.u32 2147483647, %v197_v58  ;;  %v369_v25 = vsel %vm359_vm2, %v355_v29, 1326507024  ;;  %vm90_vm6 = vcmp.eq.f32.partialorder %v1304_v56, 0.0  ;;  %vm97_vm7 = vcmp.eq.f32.partialorder %v1343_v46, 0.0 }
  0x67   :  { %vm223_vm8 = vcmp.lt.s32.totalorder %v1242_v10, 0  ;;  %v1030_v28 = vadd.s32 4294967294, %v289_v7  ;;  %v370_v18 = vsel %vm358_vm3, %v352_v50, %v369_v25  ;;  %v204_v23 = vsub.s32 4, %v1317_v13 }
  0x68   :  { %v201_v15 = vmul.f32 %v200_v59, %v198_v1  ;;  %v1411_v19 = vmul.u32.u64.low %v1358_v2, %v367_v17  ;;  %v1412_v38 = vmul.u32.u64.high %v1358_v2, %v367_v17, %v1411_v19  ;;  %v277_v24 = vadd.s32 %v1330_v27, %v1338_v39 }
  0x69   :  { %v371_v26 = vsel %vm357_vm5, %v368_v12, %v370_v18  ;;  %vm1031_vm9 = vcmp.lt.s32.totalorder %v1030_v28, 0  ;;  %v363_v30 = vsel %vm357_vm5, %v360_v8, %v362_v16  ;;  %v307_v47 = vsub.s32 4, %v1367_v14 }
  0x6a   :  { %v202_v20 = vxor.u32 2147483648, %v201_v15  ;;  %v1421_v34 = vmul.u32.u64.low %v1358_v2, %v371_v26  ;;  %v1422_v41 = vmul.u32.u64.high %v1358_v2, %v371_v26, %v1421_v34  ;;  %v292_v45 = vsel %vm1031_vm9, 0, %v1030_v28 }
  0x6b   :  { %v430_v49 = vand.u32 2139095040, %v1349_v54  ;;  %v293_v39 = vsub.s32 32, %v292_v45  ;;  %v294_v35 = vshll.u32 %v1384_v32, %v292_v45  ;;  %v297_v50 = vsub.s32 4294967266, %v292_v45 }
  0x6c   :  { %v203_v36 = vsel %vm120_vm15, %v202_v20, %v201_v15  ;;  %v379_v33 = vmul.u32 %v1358_v2, %v363_v30  ;;  %v382_v52 = vadd.s32 1, %v1412_v38  ;;  %v205_v58 = vsel %vm120_vm15, %v204_v23, %v1317_v13 }
  0x6d   :  { %v206_v27 = vsel %vm1389_vm0, %v1240_v9, %v203_v36  ;;  %v431_v53 = vshrl.u32 %v430_v49, 23  ;;  %v295_v59 = vshrl.u32 %v277_v24, %v293_v39  ;;  %v298_v29 = vadd.s32 127, %v297_v50 }
  0x6e   :  { %1093 = vcosq.f32 %v206_v27  ;;  %v96_v22 = vsel %vm95_vm4, %v1343_v46, %v94_v3  ;;  %v1440_v61 = vmul.f32 -2.0, %v79_v60  ;;  %vm381_vm10 = vc.u32 %v1422_v41, %v1411_v19 }
  0x6f   :  { %1095 = vsinq.f32 %v206_v27  ;;  %v1036_v2 = vadd.s32 4294967169, %v431_v53  ;;  %v296_v32 = vor.u32 %v295_v59, %v294_v35  ;;  %v299_v1 = vshll.u32 %v298_v29, 23 }
  0x70   :  { %v383_v4 = vsel %vm381_vm10, %v382_v52, %v1412_v38  ;;  %v434_v13 = vand.u32 8388607, %v427_v63  ;;  %v207_v6 = vsel %vm1389_vm0, 0, %v205_v58  ;;  %v308_v3 = vsel %vm223_vm8, %v307_v47, %v1367_v14 }
  0x71   :  { %v384_v60 = vadd.s32 %v383_v4, %v379_v33  ;;  %v437_v7 = vadd.s32 1, %v1036_v2  ;;  %vm210_vm11 = vweird.f32 %v1240_v9  ;;  %v211_v8 = vand.u32 3, %v207_v6 }
  0x72   :  { %vm1455_vm12 = vcmp.le.f32.partialorder %v221_v57, 0.7853982  ;;  %v300_v12 = vor.u32 4788187, %v299_v1  ;;  %v303_v15 = vcvt.s32.f32 %v296_v32  ;;  %v1464_v43 = vsel %vm90_vm6, %v91_v0, %v1381_v31 }
  0x73   :  { %v1470_v14 = vsel %vm97_vm7, %v98_v5, %v96_v22  ;;  %v385_v16 = vadd.s32 536870912, %v384_v60  ;;  %vm438_vm13 = vcmp.gt.s32.totalorder %v437_v7, 0  ;;  %v310_v17 = vsel %vm1455_vm12, 0, %v308_v3  ;;  %v954_v22 = vld [vmem:[#allocation2] sm:$0xff] }
  0x74   :  { %v301_v57 = vand.u32 2147483647, %v300_v12  ;;  %v435_v25 = vor.u32 8388608, %v434_v13  ;;  %v439_v28 = vsel %vm438_vm13, %v437_v7, 0  ;;  %1097 = vrsqrt.f32 %v1440_v61 }
  0x75   :  { %v1475_v18 = vshrl.u32 %v385_v16, 30  ;;  %v441_v56 = vand.u32 31, %v439_v28  ;;  %v627_v0 = vadd.s32 3, %v207_v6  ;;  %vm212_vm14 = vcmp.lt.s32.totalorder %v211_v8, 2 }
  0x76   :  { %vm213_vm15 = vcmp.eq.s32.totalorder %v211_v8, 0  ;;  %vm216_vm0 = vcmp.eq.s32.totalorder %v211_v8, 2  ;;  %v304_v46 = vmul.f32 %v303_v15, %v301_v57  ;;  %v1479_v31 = vand.u32 3, %v310_v17 }
  0x77   :  { %v387_v38 = vshll.u32 %v1475_v18, 30  ;;  %v442_v20 = vsub.s32 32, %v441_v56  ;;  %v731_v23 = vadd.s32 3, %v310_v17  ;;  %v1487_v34 = vadd.s32 %v1411_v19, %v1422_v41 }
  0x78   :  { %v1477_v5 = vpop.eup %1093  ;;  %v305_v30 = vxor.u32 2147483648, %v304_v46  ;;  %v1489_v36 = vshll.u32 %v435_v25, 8  ;;  %v444_v49 = vshll.u32 %v1191_v40, %v441_v56  ;;  %v1495_v27 = vand.u32 3, %v627_v0 }
  0x79   :  { %v1482_v24 = vpop.eup %1095  ;;  %v217_v26 = vxor.u32 2147483648, %v1477_v5  ;;  %v1492_v47 = vsub.s32 %v384_v60, %v387_v38  ;;  %v445_v19 = vshrl.u32 %v1192_v42, %v442_v20  ;;  %v447_v41 = vshll.u32 %v1192_v42, %v441_v56 }
  0x7a   :  { %v214_v45 = vxor.u32 2147483648, %v1482_v24  ;;  %v306_v35 = vsel %vm223_vm8, %v305_v30, %v304_v46  ;;  %v1513_v53 = vand.u32 3, %v731_v23  ;;  %v1516_v59 = vshrl.u32 %v439_v28, 5 }
  0x7b   :  { %v218_v39 = vsel %vm216_vm0, %v217_v26, %v1482_v24  ;;  %v309_v33 = vsel %vm1455_vm12, %v1242_v10, %v306_v35  ;;  %v390_v52 = vsub.s32 0, %v1492_v47  ;;  %v448_v42 = vshrl.u32 %v1193_v44, %v442_v20 }
  0x7c   :  { %v215_v50 = vsel %vm213_vm15, %v1477_v5, %v214_v45  ;;  %1099 = vcosq.f32 %v309_v33  ;;  %v410_v32 = vsub.s32 4, %v1475_v18  ;;  %vm319_vm1 = vcmp.eq.s32.totalorder %v1479_v31, 2 }
  0x7d   :  { %v219_v58 = vsel %vm212_vm14, %v215_v50, %v218_v39  ;;  %1101 = vsinq.f32 %v309_v33  ;;  %v1033_v2 = vmin.u32 %v390_v52, %v1492_v47  ;;  %v443_v4 = vshrl.u32 %v1191_v40, %v442_v20 }
  0x7e   :  { %v220_v29 = vsel %vm210_vm11, nan, %v219_v58  ;;  %v446_v13 = vor.u32 %v445_v19, %v444_v49  ;;  %v449_v6 = vor.u32 %v448_v42, %v447_v41  ;;  %v1526_v3 = vpop.eup %1097  ;;  %vm316_vm2 = vcmp.eq.s32.totalorder %v1479_v31, 0 }
  0x7f   :  { %v530_v1 = vmul.f32 %v220_v29, %v1464_v43  ;;  %v392_v60 = vclz %v1033_v2  ;;  %v450_v7 = vshll.u32 %v1193_v44, %v441_v56  ;;  %v451_v8 = vshrl.u32 %v1194_v51, %v442_v20 }
  0x80   :  { %v453_v11 = vshll.u32 %v1194_v51, %v441_v56  ;;  %vm315_vm3 = vcmp.lt.s32.totalorder %v1479_v31, 2  ;;  %v454_v15 = vshrl.u32 %v1195_v55, %v442_v20  ;;  %v456_v40 = vshll.u32 %v1195_v55, %v441_v56 }
  0x81   :  { %v966_v12 = vadd.f32 %v954_v22, %v530_v1  ;;  %v457_v16 = vshrl.u32 %v1196_v62, %v442_v20  ;;  %vm630_vm4 = vcmp.eq.s32.totalorder %v1495_v27, 0  ;;  %vm313_vm5 = vweird.f32 %v1242_v10 }
  0x82   :  { %v1034_v57 = vadd.s32 4294967294, %v392_v60  ;;  %v452_v17 = vor.u32 %v451_v8, %v450_v7  ;;  %vm459_vm6 = vcmp.lt.s32.totalorder %v1516_v59, 1  ;;  %vm460_vm7 = vcmp.lt.s32.totalorder %v1516_v59, 2 }
  0x83   :  { %vm633_vm8 = vcmp.eq.s32.totalorder %v1495_v27, 2  ;;  %v978_v44 = vmax.f32 %v966_v12, 0.0  ;;  %v455_v51 = vor.u32 %v454_v15, %v453_v11  ;;  %v458_v25 = vor.u32 %v457_v16, %v456_v40  ;;  %v955_v16 = vld [vmem:[#allocation2 + $0x8] sm:$0xff] }
  0x84   :  { %vm461_vm9 = vcmp.lt.s32.totalorder %v1516_v59, 3  ;;  %vm629_vm10 = vcmp.lt.s32.totalorder %v1495_v27, 2  ;;  %vm1035_vm12 = vcmp.lt.s32.totalorder %v1034_v57, 0  ;;  %vm462_vm13 = vcmp.lt.s32.totalorder %v1516_v59, 4 }
  0x85   :  { %v463_v55 = vsel %vm459_vm6, %v443_v4, %v446_v13  ;;  %v467_v62 = vsel %vm459_vm6, %v446_v13, %v449_v6  ;;  %v982_v28 = vmin.f32 %v978_v44, 1.0  ;;  %v395_v56 = vsel %vm1035_vm12, 0, %v1034_v57 }
  0x86   :  { %v464_v0 = vsel %vm462_vm13, %v452_v17, 2102212464  ;;  %v468_v46 = vsel %vm462_vm13, %v455_v51, 920167782  ;;  %v396_v38 = vsub.s32 32, %v395_v56  ;;  %v397_v20 = vshll.u32 %v1492_v47, %v395_v56  ;;  %v1100_v49 = vpop.eup %1099 }
  0x87   :  { %v400_v23 = vsub.s32 4294967266, %v395_v56  ;;  %v465_v30 = vsel %vm461_vm9, %v449_v6, %v464_v0  ;;  %986 = vst [vmem:[#allocation7] sm:$0xff] %v982_v28  ;;  %v469_v35 = vsel %vm461_vm9, %v452_v17, %v468_v46  ;;  %v471_v19 = vsel %vm459_vm6, %v449_v6, %v452_v17  ;;  %v1102_v50 = vpop.eup %1101 }
  0x88   :  { %v466_v39 = vsel %vm460_vm7, %v463_v55, %v465_v30  ;;  %v472_v41 = vsel %vm462_vm13, %v458_v25, 1326507024  ;;  %v320_v47 = vxor.u32 2147483648, %v1100_v49  ;;  %vm326_vm14 = vcmp.lt.s32.totalorder %v1258_v48, 0 }
  0x89   :  { %v398_v33 = vshrl.u32 %v1487_v34, %v396_v38  ;;  %v401_v52 = vadd.s32 127, %v400_v23  ;;  %v470_v58 = vsel %vm460_vm7, %v467_v62, %v469_v35  ;;  %v317_v42 = vxor.u32 2147483648, %v1102_v50 }
  0x8a   :  { %v473_v29 = vsel %vm461_vm9, %v455_v51, %v472_v41  ;;  %v1570_v22 = vmul.u32.u64.low %v1489_v36, %v470_v58  ;;  %v1571_v2 = vmul.u32.u64.high %v1489_v36, %v470_v58, %v1570_v22  ;;  %v321_v1 = vsel %vm319_vm1, %v320_v47, %v1102_v50 }
  0x8b   :  { %v399_v4 = vor.u32 %v398_v33, %v397_v20  ;;  %v402_v13 = vshll.u32 %v401_v52, 23  ;;  %v474_v34 = vsel %vm460_vm7, %v471_v19, %v473_v29  ;;  %v318_v6 = vsel %vm316_vm2, %v1100_v49, %v317_v42  ;;  %v959_v20 = vld [vmem:[#allocation2 + $0x28] sm:$0xff] }
  0x8c   :  { %v1581_v60 = vmul.u32.u64.low %v1489_v36, %v474_v34  ;;  %v1582_v7 = vmul.u32.u64.high %v1489_v36, %v474_v34, %v1581_v60  ;;  %v482_v8 = vmul.u32 %v1489_v36, %v466_v39  ;;  %v322_v11 = vsel %vm315_vm3, %v318_v6, %v321_v1 }
  0x8d   :  { %v403_v12 = vor.u32 4788187, %v402_v13  ;;  %v406_v15 = vcvt.s32.f32 %v399_v4  ;;  %v632_v59 = vsel %vm630_vm4, %v1477_v5, %v214_v45  ;;  %v323_v40 = vsel %vm313_vm5, nan, %v322_v11  ;;  %v958_v5 = vld [vmem:[#allocation2 + $0x20] sm:$0xff] }
  0x8e   :  { %v485_v57 = vadd.s32 1, %v1571_v2  ;;  %v635_v31 = vsel %vm633_vm8, %v217_v26, %v1482_v24  ;;  %vm734_vm15 = vcmp.eq.s32.totalorder %v1513_v53, 0  ;;  %v531_v36 = vmul.f32 %v323_v40, %v1470_v14 }
  0x8f   :  { %v404_v17 = vand.u32 2147483647, %v403_v12  ;;  %v636_v45 = vsel %vm629_vm10, %v632_v59, %v635_v31  ;;  %vm733_vm0 = vcmp.lt.s32.totalorder %v1513_v53, 2  ;;  %vm484_vm1 = vc.u32 %v1582_v7, %v1570_v22 }
  0x90   :  { %v637_v44 = vsel %vm210_vm11, nan, %v636_v45  ;;  %v736_v51 = vsel %vm734_vm15, %v1100_v49, %v317_v42  ;;  %vm737_vm2 = vcmp.eq.s32.totalorder %v1513_v53, 2  ;;  %v967_v24 = vadd.f32 %v955_v16, %v531_v36 }
  0x91   :  { %v407_v26 = vmul.f32 %v406_v15, %v404_v17  ;;  %v486_v25 = vsel %vm484_vm1, %v485_v57, %v1571_v2  ;;  %v950_v55 = vmul.f32 %v637_v44, %v1464_v43  ;;  %vm1614_vm3 = vcmp.le.f32.partialorder %v324_v21, 0.7853982 }
  0x92   :  { %v411_v9 = vsel %vm326_vm14, %v410_v32, %v1475_v18  ;;  %v487_v62 = vadd.s32 %v486_v25, %v482_v8  ;;  %v739_v28 = vsel %vm737_vm2, %v320_v47, %v1102_v50  ;;  %v979_v56 = vmax.f32 %v967_v24, 0.0  ;;  %v960_v25 = vld [vmem:[#allocation2 + $0x30] sm:$0xff] }
  0x93   :  { %v408_v0 = vxor.u32 2147483648, %v407_v26  ;;  %v974_v46 = vadd.f32 %v958_v5, %v950_v55  ;;  %v740_v43 = vsel %vm733_vm0, %v736_v51, %v739_v28  ;;  %v413_v53 = vsel %vm1614_vm3, 0, %v411_v9  ;;  %v956_v5 = vld [vmem:[#allocation2 + $0x10] sm:$0xff] }
  0x94   :  { %v488_v38 = vadd.s32 536870912, %v487_v62  ;;  %v741_v21 = vsel %vm313_vm5, nan, %v740_v43  ;;  %v983_v23 = vmin.f32 %v979_v56, 1.0  ;;  %v65_v39 = vmul.f32 1.5258789e-05, %v1352_v37 }
  0x95   :  { %v409_v30 = vsel %vm326_vm14, %v408_v0, %v407_v26  ;;  %v990_v49 = vmax.f32 %v974_v46, 0.0  ;;  %v951_v18 = vmul.f32 %v741_v21, %v1470_v14  ;;  %v835_v50 = vadd.s32 3, %v413_v53 }
  0x96   :  { %v412_v32 = vsel %vm1614_vm3, %v1258_v48, %v409_v30  ;;  %v1636_v35 = vshrl.u32 %v488_v38, 30  ;;  %987 = vst [vmem:[#allocation7 + $0x8] sm:$0xff] %v983_v23  ;;  %v101_v58 = vmul.f32 %v1526_v3, %v1440_v61  ;;  %v417_v37 = vand.u32 3, %v413_v53 }
  0x97   :  { %1103 = vcosq.f32 %v412_v32  ;;  %v994_v10 = vmin.f32 %v990_v49, 1.0  ;;  %v975_v19 = vadd.f32 %v959_v20, %v951_v18  ;;  %v836_v42 = vand.u32 3, %v835_v50 }
  0x98   :  { %1105 = vsinq.f32 %v412_v32  ;;  %v490_v41 = vshll.u32 %v1636_v35, 30  ;;  %vm102_vm11 = vcmp.eq.f32.partialorder %v1440_v61, inf  ;;  %vm104_vm4 = vcmp.eq.f32.partialorder %v1440_v61, 0.0 }
  0x99   :  { %998 = vst [vmem:[#allocation7 + $0x20] sm:$0xff] %v994_v10  ;;  %v991_v14 = vmax.f32 %v975_v19, 0.0  ;;  %1107 = vlog2.f32 %v65_v39  ;;  %v103_v4 = vsel %vm102_vm11, %v1440_v61, %v101_v58  ;;  %v105_v13 = vand.u32 2147483648, %v1440_v61 }
  0x9a   :  { %v491_v47 = vsub.s32 %v487_v62, %v490_v41  ;;  %vm422_vm5 = vcmp.eq.s32.totalorder %v417_v37, 2  ;;  %vm841_vm6 = vcmp.eq.s32.totalorder %v836_v42, 2  ;;  %vm419_vm7 = vcmp.eq.s32.totalorder %v417_v37, 0 }
  0x9b   :  { %v995_v33 = vmin.f32 %v991_v14, 1.0  ;;  %vm838_vm8 = vcmp.eq.s32.totalorder %v836_v42, 0  ;;  %vm416_vm9 = vweird.f32 %v1258_v48  ;;  %vm418_vm10 = vcmp.lt.s32.totalorder %v417_v37, 2 }
  0x9c   :  { %v493_v52 = vsub.s32 0, %v491_v47  ;;  %v483_v8 = vadd.s32 %v1570_v22, %v1582_v7  ;;  %vm837_vm13 = vcmp.lt.s32.totalorder %v836_v42, 2  ;;  %v106_v59 = vsel %vm104_vm4, %v105_v13, %v103_v4 }
  0x9d   :  { %999 = vst [vmem:[#allocation7 + $0x28] sm:$0xff] %v995_v33  ;;  %v513_v23 = vsub.s32 4, %v1636_v35  ;;  %vm429_vm14 = vcmp.lt.s32.totalorder %v1349_v54, 0  ;;  %vm428_vm15 = vcmp.le.f32.partialorder %v427_v63, 0.7853982 }
  0x9e   :  { %v1037_v29 = vmin.u32 %v493_v52, %v491_v47 }
  0x9f   :  { %v514_v18 = vsel %vm429_vm14, %v513_v23, %v1636_v35 }
  0xa0   :  { %v495_v2 = vclz %v1037_v29  ;;  %v516_v39 = vsel %vm428_vm15, 0, %v514_v18 }
  0xa1   :  { %v1104_v1 = vpop.eup %1103  ;;  %v939_v10 = vadd.s32 3, %v516_v39  ;;  %v520_v41 = vand.u32 3, %v516_v39 }
  0xa2   :  { %v1106_v34 = vpop.eup %1105  ;;  %v423_v6 = vxor.u32 2147483648, %v1104_v1  ;;  %v1038_v3 = vadd.s32 4294967294, %v495_v2 }
  0xa3   :  { %v420_v60 = vxor.u32 2147483648, %v1106_v34  ;;  %v1108_v11 = vpop.eup %1107  ;;  %v940_v14 = vand.u32 3, %v939_v10  ;;  %vm525_vm2 = vcmp.eq.s32.totalorder %v520_v41, 2  ;;  %vm522_vm11 = vcmp.eq.s32.totalorder %v520_v41, 0 }
  0xa4   :  { %v424_v12 = vsel %vm422_vm5, %v423_v6, %v1106_v34  ;;  %vm1039_vm12 = vcmp.lt.s32.totalorder %v1038_v3, 0  ;;  %v843_v15 = vsel %vm841_vm6, %v423_v6, %v1106_v34  ;;  %v81_v22 = vmul.f32 0.6931472, %v1108_v11  ;;  %v957_v6 = vld [vmem:[#allocation2 + $0x18] sm:$0xff] }
  0xa5   :  { %v421_v40 = vsel %vm419_vm7, %v1104_v1, %v420_v60  ;;  %v498_v16 = vsel %vm1039_vm12, 0, %v1038_v3  ;;  %v840_v57 = vsel %vm838_vm8, %v1104_v1, %v420_v60  ;;  %vm945_vm3 = vcmp.eq.s32.totalorder %v940_v14, 2  ;;  %v961_v60 = vld [vmem:[#allocation2 + $0x38] sm:$0xff] }
  0xa6   :  { %v425_v31 = vsel %vm418_vm10, %v421_v40, %v424_v12  ;;  %v499_v36 = vsub.s32 32, %v498_v16  ;;  %v500_v17 = vshll.u32 %v491_v47, %v498_v16  ;;  %v503_v45 = vsub.s32 4294967266, %v498_v16 }
  0xa7   :  { %v426_v44 = vsel %vm416_vm9, nan, %v425_v31  ;;  %v844_v7 = vsel %vm837_vm13, %v840_v57, %v843_v15  ;;  %v85_v0 = vmul.f32 -2.0, %v81_v22  ;;  %vm942_vm4 = vcmp.eq.s32.totalorder %v940_v14, 0 }
  0xa8   :  { %v532_v51 = vmul.f32 %v426_v44, %v106_v59  ;;  %v501_v24 = vshrl.u32 %v483_v8, %v499_v36  ;;  %v504_v26 = vadd.s32 127, %v503_v45  ;;  %v845_v61 = vsel %vm416_vm9, nan, %v844_v7 }
  0xa9   :  { %v952_v55 = vmul.f32 %v845_v61, %v106_v59  ;;  %1109 = vrsqrt.f32 %v85_v0  ;;  %vm109_vm0 = vcmp.eq.f32.partialorder %v85_v0, inf  ;;  %vm111_vm1 = vcmp.eq.f32.partialorder %v85_v0, 0.0 }
  0xaa   :  { %v968_v27 = vadd.f32 %v956_v5, %v532_v51  ;;  %v502_v9 = vor.u32 %v501_v24, %v500_v17  ;;  %v505_v62 = vshll.u32 %v504_v26, 23  ;;  %v112_v33 = vand.u32 2147483648, %v85_v0 }
  0xab   :  { %v976_v28 = vadd.f32 %v960_v25, %v952_v55  ;;  %vm521_vm5 = vcmp.lt.s32.totalorder %v520_v41, 2  ;;  %vm941_vm6 = vcmp.lt.s32.totalorder %v940_v14, 2  ;;  %vm519_vm7 = vweird.f32 %v1349_v54 }
  0xac   :  { %v980_v56 = vmax.f32 %v968_v27, 0.0  ;;  %v506_v46 = vor.u32 4788187, %v505_v62  ;;  %v509_v43 = vcvt.s32.f32 %v502_v9 }
  0xad   :  { %v992_v38 = vmax.f32 %v976_v28, 0.0 }
  0xae   :  { %v984_v21 = vmin.f32 %v980_v56, 1.0  ;;  %v507_v20 = vand.u32 2147483647, %v506_v46 }
  0xaf   :  { %v996_v30 = vmin.f32 %v992_v38, 1.0 }
  0xb0   :  { %988 = vst [vmem:[#allocation7 + $0x10] sm:$0xff] %v984_v21  ;;  %v510_v48 = vmul.f32 %v509_v43, %v507_v20 }
  0xb1   :  { %1000 = vst [vmem:[#allocation7 + $0x30] sm:$0xff] %v996_v30 }
  0xb2   :  { %v511_v49 = vxor.u32 2147483648, %v510_v48 }
  0xb3   :  { %v1110_v19 = vpop.eup %1109 }
  0xb4   :  { %v512_v32 = vsel %vm429_vm14, %v511_v49, %v510_v48  ;;  %v108_v50 = vmul.f32 %v1110_v19, %v85_v0 }
  0xb5   :  { %v515_v53 = vsel %vm428_vm15, %v1349_v54, %v512_v32 }
  0xb6   :  { %1111 = vcosq.f32 %v515_v53  ;;  %v110_v52 = vsel %vm109_vm0, %v85_v0, %v108_v50 }
  0xb7   :  { %1113 = vsinq.f32 %v515_v53  ;;  %v113_v29 = vsel %vm111_vm1, %v112_v33, %v110_v52 }
  0xc0   :  { %v1112_v47 = vpop.eup %1111 }
  0xc1   :  { %v1114_v63 = vpop.eup %1113  ;;  %v526_v35 = vxor.u32 2147483648, %v1112_v47 }
  0xc2   :  { %v523_v58 = vxor.u32 2147483648, %v1114_v63 }
  0xc3   :  { %v527_v37 = vsel %vm525_vm2, %v526_v35, %v1114_v63  ;;  %v947_v42 = vsel %vm945_vm3, %v526_v35, %v1114_v63 }
  0xc4   :  { %v524_v2 = vsel %vm522_vm11, %v1112_v47, %v523_v58  ;;  %v944_v1 = vsel %vm942_vm4, %v1112_v47, %v523_v58 }
  0xc5   :  { %v528_v4 = vsel %vm521_vm5, %v524_v2, %v527_v37  ;;  %v948_v13 = vsel %vm941_vm6, %v944_v1, %v947_v42 }
  0xc6   :  { %v529_v34 = vsel %vm519_vm7, nan, %v528_v4  ;;  %v949_v3 = vsel %vm519_vm7, nan, %v948_v13 }
  0xc7   :  { %v533_v8 = vmul.f32 %v529_v34, %v113_v29  ;;  %v953_v11 = vmul.f32 %v949_v3, %v113_v29 }
  0xc9   :  { %v969_v12 = vadd.f32 %v957_v6, %v533_v8  ;;  %v977_v15 = vadd.f32 %v961_v60, %v953_v11 }
  0xcb   :  { %v981_v59 = vmax.f32 %v969_v12, 0.0  ;;  %v993_v40 = vmax.f32 %v977_v15, 0.0 }
  0xcd   :  { %v985_v54 = vmin.f32 %v981_v59, 1.0  ;;  %v997_v16 = vmin.f32 %v993_v40, 1.0 }
  0xcf   :  { %989 = vst [vmem:[#allocation7 + $0x18] sm:$0xff] %v985_v54  ;;  %1001 = vst [vmem:[#allocation7 + $0x38] sm:$0xff] %v997_v16 }
  0xd0   :  { %1170 = shalt.err (!%p1167_p6)
}
  0xd1   :  { %s1171_s10 = scalar_lea.hbm %s1678_s2, 1024 }
  0xd2   :  { %p1172_p7 = scmp.ne.s32.totalorder %s1678_s2, %s1171_s10  ;;  %p1175_p8 = scmp.lt.u32.totalorder %s1171_s10, %s1678_s2 }
  0xd4   :  { %p1177_p9 = pnand %p1175_p8, %p1172_p7 }
  0xd6   :  { %1180 = shalt.err (!%p1177_p9)
}
  0xd7   :  { %1013 = dma.vmem_to_hbm [thread:$0]  %s1008_s6, 1024, %s1678_s2, [#allocation4], %s1188_s19, %s1188_s19, %s1189_s20  }
  0xd8   :  { %1185 = dma.done.wait [#allocation4], 1024  }
  0xd9   :  { %1186 = vsyncadd [#allocation4], 4294966272 }
  0xda   :  { %1017 = vsyncpa [#allocation3], 1 }
  0xdb   :  { %1018 = vsyncpa [#allocation6], 1 }
  0xdc   :  { %1019 = vsyncpa [#allocation4], 1 }

</bundles_post_ra>
